<compile_context>
chip_gen: v7x
topology: tpu7x:2x2x1
jax: 0.10.0
libtpu: 0.0.40
codegen_flags: <defaults>
</compile_context>

<pallas_src>
import functools

import jax
import jax.numpy as jnp
from jax.experimental import pallas as pl
from jax.experimental.pallas import tpu as pltpu


def _ge2e_kernel(wb_ref, emb_ref, out_ref, *, n_spk, m_utt, mxu_dtype):
    """emb_ref: (R, Dp) VMEM block (f32 or bf16).

    Rows are (speaker, utterance) pairs in row-major order, zero-padded to R
    (multiple of 8); features zero-padded to Dp (multiple of 128). Zero padding
    is inert for every sum/dot below and padded rows are masked out of the
    final reduction.
    """
    n = n_spk
    m = m_utt
    nm = n * m

    w = wb_ref[0]
    b = wb_ref[1]

    emb_in = emb_ref[...]                                  # (R, Dp)
    r_rows = emb_in.shape[0]
    emb = emb_in if emb_in.dtype == jnp.float32 else emb_in.astype(jnp.float32)
    emb_mxu = emb_in if emb_in.dtype == mxu_dtype else emb_in.astype(mxu_dtype)

    eps_sq = jnp.float32(1e-16)                            # (cosine eps 1e-8)^2

    # Speaker-membership masks from iota compares (no vector int divide).
    # same_mask[r, k] == True iff row r is an utterance of speaker k.
    row_id = jax.lax.broadcasted_iota(jnp.int32, (r_rows, n), 0)
    col_lo = jax.lax.broadcasted_iota(jnp.int32, (r_rows, n), 1) * m
    same_mask = (row_id >= col_lo) & (row_id < col_lo + m)            # (R, N)

    # spk_sel[k, r] == 1.0 iff row r belongs to speaker k (padded rows -> 0).
    sel_col = jax.lax.broadcasted_iota(jnp.int32, (n, r_rows), 1)
    sel_lo = jax.lax.broadcasted_iota(jnp.int32, (n, r_rows), 0) * m
    spk_sel = ((sel_col >= sel_lo) & (sel_col < sel_lo + m)).astype(jnp.float32)
    spk_sel_mxu = spk_sel if spk_sel.dtype == mxu_dtype else spk_sel.astype(mxu_dtype)

    # Speaker centroids via one small MXU matmul: (N, R) x (R, Dp), f32 acc.
    sums = jax.lax.dot_general(spk_sel_mxu, emb_mxu, (((1,), (0,)), ((), ())),
                               preferred_element_type=jnp.float32)    # (N, Dp)
    centroids = sums * jnp.float32(1.0 / m)                           # (N, Dp)
    cen_mxu = centroids if centroids.dtype == mxu_dtype else centroids.astype(mxu_dtype)

    # Raw embedding x centroid dots straight off the MXU (contract last dims of
    # BOTH operands -> no explicit centroid transpose in user code; if MLIR
    # shows an XLU transpose of the small (N, Dp) RHS it is off the big-operand
    # path and cheap). Normalization is applied to the small (R, N) output.
    dots = jax.lax.dot_general(emb_mxu, cen_mxu, (((1,), (1,)), ((), ())),
                               preferred_element_type=jnp.float32)    # (R, N)

    # Squared norms (lane reduces) and eps-clamped inverse norms (EUP rsqrt).
    e_sq = jnp.sum(emb * emb, axis=1, keepdims=True)                  # (R, 1)
    c_sq = jnp.sum(centroids * centroids, axis=1, keepdims=True)      # (N, 1)
    inv_e = jax.lax.rsqrt(jnp.maximum(e_sq, eps_sq))                  # (R, 1)

    # Tiny sublane->lane relayout of c_sq: (N,1) -> (1,N) done as a masked
    # cross-sublane reduce (equivalent to a small XLU transpose, always lowers).
    eye = (jax.lax.broadcasted_iota(jnp.int32, (n, n), 0)
           == jax.lax.broadcasted_iota(jnp.int32, (n, n), 1))
    c_sq_row = jnp.sum(jnp.where(eye, c_sq, 0.0), axis=0, keepdims=True)  # (1, N)
    inv_c_row = jax.lax.rsqrt(jnp.maximum(c_sq_row, eps_sq))              # (1, N)

    # Full cosine matrix: post-scale the (R, N) matmul output.
    coshat = dots * inv_e * inv_c_row                                 # (R, N)

    # Leave-one-out (same-speaker) centroid similarity, algebraically:
    #   u      = (M*c - e) / (M - 1)
    #   e.u    = (M*e.c - ||e||^2) / (M - 1)
    #   ||u||^2= (M^2||c||^2 - 2M e.c + ||e||^2) / (M - 1)^2
    mask_f = same_mask.astype(jnp.float32)
    e_dot_c = jnp.sum(jnp.where(same_mask, dots, 0.0), axis=1, keepdims=True)   # (R,1)
    c_sq_same = jnp.sum(mask_f * c_sq_row, axis=1, keepdims=True)               # (R,1)

    m_f = jnp.float32(m)
    inv_m1 = jnp.float32(1.0 / (m - 1))
    e_dot_u = (m_f * e_dot_c - e_sq) * inv_m1                         # (R, 1)
    u_sq = (m_f * m_f * c_sq_same - 2.0 * m_f * e_dot_c + e_sq) * (inv_m1 * inv_m1)
    # single fused clamp handles both tiny-negative cancellation and the eps
    cos_same = e_dot_u * inv_e * jax.lax.rsqrt(jnp.maximum(u_sq, eps_sq))  # (R, 1)

    # GE2E loss. (torch.clamp(self.w, 1e-6) in the reference forward is not
    # in-place, hence a genuine no-op.)
    cossim = jnp.where(same_mask, cos_same, coshat) + 1e-6            # (R, N)
    sim = w * cossim + b
    pos = w * (cos_same + 1e-6) + b                                   # (R, 1)
    # TODO(synk): matches the reference exactly; for large learned |w| switch
    # to a max-stabilized logsumexp.
    neg = jnp.log(jnp.sum(jnp.exp(sim), axis=1, keepdims=True) + 1e-6)

    row_valid = jax.lax.broadcasted_iota(jnp.int32, (r_rows, 1), 0) < nm
    loss = jnp.sum(jnp.where(row_valid, neg - pos, 0.0))

    # Lane-dense (1, 128) output slab; caller reads element [0, 0].
    out_ref[...] = jnp.full((1, 128), loss, dtype=jnp.float32)


def ge2e_loss(embeddings, w=10.0, b=-5.0, *, mxu_dtype=None):
    """embeddings: (N, M, D); w, b: scalars. Returns scalar GE2E loss.

    mxu_dtype: dtype for the two MXU matmuls (f32 accumulate either way).
      None -> bfloat16 if the input is bfloat16, else float32.
      jnp.bfloat16 -> 2x MXU throughput on v5e/v6e/v7x, ~1e-2 relative accuracy.
    """
    n, m, d = embeddings.shape
    nm = n * m
    r_rows = ((nm + 7) // 8) * 8           # pad rows to a sublane multiple
    d_pad = ((d + 127) // 128) * 128       # pad features to a lane multiple

    emb_flat = embeddings.reshape(nm, d)   # free metadata reshape
    if emb_flat.dtype not in (jnp.float32, jnp.bfloat16):
        emb_flat = emb_flat.astype(jnp.float32)
    if r_rows != nm or d_pad != d:         # skip the extra HBM copy when aligned
        emb_flat = jnp.pad(emb_flat, ((0, r_rows - nm), (0, d_pad - d)))

    if mxu_dtype is None:
        mxu_dtype = jnp.bfloat16 if emb_flat.dtype == jnp.bfloat16 else jnp.float32

    wb = jnp.asarray([w, b], dtype=jnp.float32)

    block_bytes = r_rows * d_pad * emb_flat.dtype.itemsize
    vmem_limit = int(min(64 * 1024 * 1024,
                         max(32 * 1024 * 1024, 4 * block_bytes + (4 << 20))))

    out = pl.pallas_call(
        functools.partial(_ge2e_kernel, n_spk=n, m_utt=m, mxu_dtype=mxu_dtype),
        out_shape=jax.ShapeDtypeStruct((1, 128), jnp.float32),
        in_specs=[
            pl.BlockSpec(memory_space=pltpu.MemorySpace.SMEM),   # packed (w, b)
            pl.BlockSpec((r_rows, d_pad), lambda: (0, 0)),       # embeddings
        ],
        out_specs=pl.BlockSpec((1, 128), lambda: (0, 0)),
        compiler_params=pltpu.CompilerParams(vmem_limit_bytes=vmem_limit),
    )(wb, emb_flat)
    return out[0, 0]


def _ge2e_loss_ref(embeddings, w, b):
    """Pure-JAX reference mirroring the PyTorch module."""
    emb = embeddings.astype(jnp.float32)
    N, M, D = emb.shape
    sums = jnp.sum(emb, axis=1)
    centroids = sums / M
    utt_c = (sums[:, None, :] - emb) / (M - 1)
    eps = 1e-8
    emb_norm = jnp.maximum(jnp.linalg.norm(emb, axis=-1), eps)
    utt_norm = jnp.maximum(jnp.linalg.norm(utt_c, axis=-1), eps)
    cen_norm = jnp.maximum(jnp.linalg.norm(centroids, axis=-1), eps)
    cos_same = jnp.sum(emb * utt_c, axis=-1) / (emb_norm * utt_norm)
    dots = jnp.einsum("nmd,kd->nmk", emb, centroids)
    cos_diff = dots / (emb_norm[:, :, None] * cen_norm[None, None, :])
    idx = jnp.arange(N)
    cos_diff = cos_diff.at[idx, :, idx].set(cos_same)
    cossim = cos_diff + 1e-6
    sim = w * cossim + b
    pos = sim[idx, :, idx]
    neg = jnp.log(jnp.sum(jnp.exp(sim), axis=2) + 1e-6)
    return jnp.sum(-(pos - neg))


if __name__ == "__main__":
    # GE2ELoss.__init__: w = 10.0, b = -5.0 (deterministic parameters)
    W0, B0 = 10.0, -5.0

    # 4 speakers, 5 utterances, 32-d embeddings
    key = jax.random.PRNGKey(0)
    embeddings = jax.random.normal(key, (4, 5, 32), dtype=jnp.float32)

    ref = _ge2e_loss_ref(embeddings, W0, B0)

    # f32 MXU operands: matches the f32 reference tightly.
    loss = ge2e_loss(embeddings, W0, B0)
    jax.block_until_ready(loss)
    assert jnp.allclose(loss, ref, rtol=1e-3, atol=1e-3), (loss, ref)

    # bf16 MXU operands (2x MXU throughput on v5e/v6e/v7x): looser tolerance.
    loss_bf16 = ge2e_loss(embeddings, W0, B0, mxu_dtype=jnp.bfloat16)
    jax.block_until_ready(loss_bf16)
    assert jnp.allclose(loss_bf16, ref, rtol=5e-2, atol=1.0), (loss_bf16, ref)

    print("KERNEL_OK")
</pallas_src>

<mosaic_0001>
module attributes {stable_mosaic.version = 11 : i64} {
  func.func @_ge2e_kernel(%arg0: memref<2xf32, #tpu.memory_space<smem>>, %arg1: memref<24x128xf32, #tpu.memory_space<vmem>>, %arg2: memref<1x128xf32, #tpu.memory_space<vmem>>) attributes {dimension_semantics = [], scalar_prefetch = 0 : i64, scratch_operands = 0 : i64, tpu.core_type = #tpu.core_type<tc>} {
    %c0 = arith.constant 0 : index
    %0 = memref.load %arg0[%c0] : memref<2xf32, #tpu.memory_space<smem>>
    %c1 = arith.constant 1 : index
    %1 = memref.load %arg0[%c1] : memref<2xf32, #tpu.memory_space<smem>>
    %c0_0 = arith.constant 0 : index
    %c0_1 = arith.constant 0 : index
    %2 = vector.load %arg1[%c0_0, %c0_1] : memref<24x128xf32, #tpu.memory_space<vmem>>, vector<24x128xf32>
    %3 = tpu.iota {dimensions = array<i32: 0>} : vector<24x4xi32>
    %4 = tpu.iota {dimensions = array<i32: 1>} : vector<24x4xi32>
    %c5_i32 = arith.constant 5 : i32
    %5 = vector.broadcast %c5_i32 : i32 to vector<24x4xi32>
    %6 = arith.muli %4, %5 : vector<24x4xi32>
    %7 = arith.cmpi sge, %3, %6 : vector<24x4xi32>
    %c5_i32_2 = arith.constant 5 : i32
    %8 = vector.broadcast %c5_i32_2 : i32 to vector<24x4xi32>
    %9 = arith.addi %6, %8 : vector<24x4xi32>
    %10 = arith.cmpi slt, %3, %9 : vector<24x4xi32>
    %11 = arith.andi %7, %10 : vector<24x4xi1>
    %12 = tpu.iota {dimensions = array<i32: 1>} : vector<4x24xi32>
    %13 = tpu.iota {dimensions = array<i32: 0>} : vector<4x24xi32>
    %c5_i32_3 = arith.constant 5 : i32
    %14 = vector.broadcast %c5_i32_3 : i32 to vector<4x24xi32>
    %15 = arith.muli %13, %14 : vector<4x24xi32>
    %16 = arith.cmpi sge, %12, %15 : vector<4x24xi32>
    %c5_i32_4 = arith.constant 5 : i32
    %17 = vector.broadcast %c5_i32_4 : i32 to vector<4x24xi32>
    %18 = arith.addi %15, %17 : vector<4x24xi32>
    %19 = arith.cmpi slt, %12, %18 : vector<4x24xi32>
    %20 = arith.andi %16, %19 : vector<4x24xi1>
    %21 = arith.extui %20 : vector<4x24xi1> to vector<4x24xi32>
    %22 = arith.sitofp %21 : vector<4x24xi32> to vector<4x24xf32>
    %cst = arith.constant dense<0.000000e+00> : vector<4x128xf32>
    %23 = tpu.matmul %22, %2, %cst {dimension_numbers = #tpu.dot_dimension_numbers<[1], [0], [0], [1], [0, 0, 1, 1], [], []>} : vector<4x24xf32>, vector<24x128xf32>, vector<4x128xf32> -> vector<4x128xf32>
    %cst_5 = arith.constant 2.000000e-01 : f32
    %24 = vector.broadcast %cst_5 : f32 to vector<4x128xf32>
    %25 = arith.mulf %23, %24 : vector<4x128xf32>
    %cst_6 = arith.constant dense<0.000000e+00> : vector<24x4xf32>
    %26 = tpu.matmul %2, %25, %cst_6 {dimension_numbers = #tpu.dot_dimension_numbers<[1], [1], [0], [0], [0, 0, 1, 0], [], []>} : vector<24x128xf32>, vector<4x128xf32>, vector<24x4xf32> -> vector<24x4xf32>
    %27 = arith.mulf %2, %2 : vector<24x128xf32>
    %cst_7 = arith.constant dense<0.000000e+00> : vector<24xf32>
    %28 = vector.multi_reduction <add>, %27, %cst_7 [1] : vector<24x128xf32> to vector<24xf32>
    %29 = vector.shape_cast %28 : vector<24xf32> to vector<24x1xf32>
    %30 = arith.mulf %25, %25 : vector<4x128xf32>
    %cst_8 = arith.constant dense<0.000000e+00> : vector<4xf32>
    %31 = vector.multi_reduction <add>, %30, %cst_8 [1] : vector<4x128xf32> to vector<4xf32>
    %32 = vector.shape_cast %31 : vector<4xf32> to vector<4x1xf32>
    %cst_9 = arith.constant 1.000000e-16 : f32
    %33 = vector.broadcast %cst_9 : f32 to vector<24x1xf32>
    %34 = arith.maximumf %29, %33 : vector<24x1xf32>
    %35 = math.rsqrt %34 : vector<24x1xf32>
    %36 = tpu.iota {dimensions = array<i32: 0>} : vector<4x4xi32>
    %37 = tpu.iota {dimensions = array<i32: 1>} : vector<4x4xi32>
    %38 = arith.cmpi eq, %36, %37 : vector<4x4xi32>
    %cst_10 = arith.constant 0.000000e+00 : f32
    %39 = vector.shape_cast %32 : vector<4x1xf32> to vector<4x1xf32>
    %40 = vector.broadcast %39 : vector<4x1xf32> to vector<4x4xf32>
    %41 = vector.broadcast %cst_10 : f32 to vector<4x4xf32>
    %42 = arith.select %38, %40, %41 : vector<4x4xi1>, vector<4x4xf32>
    %cst_11 = arith.constant dense<0.000000e+00> : vector<4xf32>
    %43 = vector.multi_reduction <add>, %42, %cst_11 [0] : vector<4x4xf32> to vector<4xf32>
    %44 = vector.shape_cast %43 : vector<4xf32> to vector<1x4xf32>
    %cst_12 = arith.constant 1.000000e-16 : f32
    %45 = vector.broadcast %cst_12 : f32 to vector<1x4xf32>
    %46 = arith.maximumf %44, %45 : vector<1x4xf32>
    %47 = math.rsqrt %46 : vector<1x4xf32>
    %48 = vector.broadcast %35 : vector<24x1xf32> to vector<24x4xf32>
    %49 = arith.mulf %26, %48 : vector<24x4xf32>
    %50 = vector.broadcast %47 : vector<1x4xf32> to vector<24x4xf32>
    %51 = arith.mulf %49, %50 : vector<24x4xf32>
    %52 = arith.extui %11 : vector<24x4xi1> to vector<24x4xi32>
    %53 = arith.sitofp %52 : vector<24x4xi32> to vector<24x4xf32>
    %cst_13 = arith.constant 0.000000e+00 : f32
    %54 = vector.broadcast %cst_13 : f32 to vector<24x4xf32>
    %55 = arith.select %11, %26, %54 : vector<24x4xi1>, vector<24x4xf32>
    %cst_14 = arith.constant dense<0.000000e+00> : vector<24xf32>
    %56 = vector.multi_reduction <add>, %55, %cst_14 [1] : vector<24x4xf32> to vector<24xf32>
    %57 = vector.shape_cast %56 : vector<24xf32> to vector<24x1xf32>
    %58 = vector.broadcast %44 : vector<1x4xf32> to vector<24x4xf32>
    %59 = arith.mulf %53, %58 : vector<24x4xf32>
    %cst_15 = arith.constant dense<0.000000e+00> : vector<24xf32>
    %60 = vector.multi_reduction <add>, %59, %cst_15 [1] : vector<24x4xf32> to vector<24xf32>
    %61 = vector.shape_cast %60 : vector<24xf32> to vector<24x1xf32>
    %cst_16 = arith.constant 5.000000e+00 : f32
    %62 = vector.broadcast %cst_16 : f32 to vector<24x1xf32>
    %63 = arith.mulf %62, %57 : vector<24x1xf32>
    %64 = arith.subf %63, %29 : vector<24x1xf32>
    %cst_17 = arith.constant 2.500000e-01 : f32
    %65 = vector.broadcast %cst_17 : f32 to vector<24x1xf32>
    %66 = arith.mulf %64, %65 : vector<24x1xf32>
    %cst_18 = arith.constant 5.000000e+00 : f32
    %cst_19 = arith.constant 5.000000e+00 : f32
    %67 = arith.mulf %cst_18, %cst_19 : f32
    %68 = vector.broadcast %67 : f32 to vector<24x1xf32>
    %69 = arith.mulf %68, %61 : vector<24x1xf32>
    %cst_20 = arith.constant 2.000000e+00 : f32
    %cst_21 = arith.constant 5.000000e+00 : f32
    %70 = arith.mulf %cst_20, %cst_21 : f32
    %71 = vector.broadcast %70 : f32 to vector<24x1xf32>
    %72 = arith.mulf %71, %57 : vector<24x1xf32>
    %73 = arith.subf %69, %72 : vector<24x1xf32>
    %74 = arith.addf %73, %29 : vector<24x1xf32>
    %cst_22 = arith.constant 2.500000e-01 : f32
    %cst_23 = arith.constant 2.500000e-01 : f32
    %75 = arith.mulf %cst_22, %cst_23 : f32
    %76 = vector.broadcast %75 : f32 to vector<24x1xf32>
    %77 = arith.mulf %74, %76 : vector<24x1xf32>
    %78 = arith.mulf %66, %35 : vector<24x1xf32>
    %cst_24 = arith.constant 1.000000e-16 : f32
    %79 = vector.broadcast %cst_24 : f32 to vector<24x1xf32>
    %80 = arith.maximumf %77, %79 : vector<24x1xf32>
    %81 = math.rsqrt %80 : vector<24x1xf32>
    %82 = arith.mulf %78, %81 : vector<24x1xf32>
    %83 = vector.shape_cast %82 : vector<24x1xf32> to vector<24x1xf32>
    %84 = vector.broadcast %83 : vector<24x1xf32> to vector<24x4xf32>
    %85 = arith.select %11, %84, %51 : vector<24x4xi1>, vector<24x4xf32>
    %cst_25 = arith.constant 9.99999997E-7 : f32
    %86 = vector.broadcast %cst_25 : f32 to vector<24x4xf32>
    %87 = arith.addf %85, %86 : vector<24x4xf32>
    %88 = vector.broadcast %0 : f32 to vector<24x4xf32>
    %89 = arith.mulf %88, %87 : vector<24x4xf32>
    %90 = vector.broadcast %1 : f32 to vector<24x4xf32>
    %91 = arith.addf %89, %90 : vector<24x4xf32>
    %cst_26 = arith.constant 9.99999997E-7 : f32
    %92 = vector.broadcast %cst_26 : f32 to vector<24x1xf32>
    %93 = arith.addf %82, %92 : vector<24x1xf32>
    %94 = vector.broadcast %0 : f32 to vector<24x1xf32>
    %95 = arith.mulf %94, %93 : vector<24x1xf32>
    %96 = vector.broadcast %1 : f32 to vector<24x1xf32>
    %97 = arith.addf %95, %96 : vector<24x1xf32>
    %98 = math.exp %91 : vector<24x4xf32>
    %cst_27 = arith.constant dense<0.000000e+00> : vector<24xf32>
    %99 = vector.multi_reduction <add>, %98, %cst_27 [1] : vector<24x4xf32> to vector<24xf32>
    %100 = vector.shape_cast %99 : vector<24xf32> to vector<24x1xf32>
    %cst_28 = arith.constant 9.99999997E-7 : f32
    %101 = vector.broadcast %cst_28 : f32 to vector<24x1xf32>
    %102 = arith.addf %100, %101 : vector<24x1xf32>
    %103 = math.log %102 : vector<24x1xf32>
    %104 = tpu.iota {dimensions = array<i32: 0>} : vector<24x1xi32>
    %c20_i32 = arith.constant 20 : i32
    %105 = vector.broadcast %c20_i32 : i32 to vector<24x1xi32>
    %106 = arith.cmpi slt, %104, %105 : vector<24x1xi32>
    %107 = arith.subf %103, %97 : vector<24x1xf32>
    %cst_29 = arith.constant 0.000000e+00 : f32
    %108 = vector.broadcast %cst_29 : f32 to vector<24x1xf32>
    %109 = arith.select %106, %107, %108 : vector<24x1xi1>, vector<24x1xf32>
    %110 = vector.shape_cast %109 : vector<24x1xf32> to vector<1x24x1xf32>
    %cst_30 = arith.constant dense<0.000000e+00> : vector<1xf32>
    %111 = vector.multi_reduction <add>, %110, %cst_30 [1, 2] : vector<1x24x1xf32> to vector<1xf32>
    %112 = vector.shape_cast %111 : vector<1xf32> to vector<1x1x1xf32>
    %113 = vector.extract %112[0, 0, 0] : f32 from vector<1x1x1xf32>
    %114 = vector.broadcast %113 : f32 to vector<1x128xf32>
    %c0_31 = arith.constant 0 : index
    %c0_32 = arith.constant 0 : index
    %115 = vector.load %arg2[%c0_31, %c0_32] : memref<1x128xf32, #tpu.memory_space<vmem>>, vector<1x128xf32>
    tpu.vector_store %arg2[%c0_31, %c0_32], %114 {strides = array<i32>} : memref<1x128xf32, #tpu.memory_space<vmem>>, vector<1x128xf32>,
    return
  }
}

</mosaic_0001>

<bundles_post_ra>
// kernel: tpu_custom_call.1
= control target key start
LH: loop header
LB: loop body
LE: loop exit
PB: predicated region body
PF: predicated region fallthrough
CT: control target
= control target key end

     0   :  { %7 = vsyncpa [#allocation5], 0  ;;  %s683_s0 = inlined_call_operand.hbm [shape: f32[2], index: 0, kind: input, shape index: {}]   ;;  %s684_s1 = inlined_call_operand.hbm [shape: f32[24,128], index: 1, kind: input, shape index: {}]   ;;  %s685_s2 = inlined_call_operand.hbm [shape: f32[1,128], index: 2, kind: output, shape index: {}]  }
   0x1   :  { %8 = vsyncpa [#allocation3], 0 }
   0x2   :  { %9 = vsyncpa [#allocation4], 0  ;;  %s488_s11 = scalar_lea.hbm %s683_s0, 16 }
   0x3   :  { %p489_p0 = scmp.ne.s32.totalorder %s683_s0, %s488_s11  ;;  %p492_p1 = scmp.lt.u32.totalorder %s488_s11, %s683_s0 }
   0x5   :  { %p494_p2 = pnand %p492_p1, %p489_p0 }
   0x7   :  { %497 = shalt.err (!%p494_p2)
}
   0x8   :  { %s548_s16 = smov [#allocation2]   ;;  %s549_s19 = smov [#allocation6]  }
   0x9   :  { %17 = dma.hbm_to_smem %s683_s0, 16, %s548_s16, [#allocation5]  }
   0xa   :  { %s23_s20 = sshll.u32 %s549_s19, 4  ;;  %s498_s23 = scalar_lea.hbm %s684_s1, 384  ;;  %s24_s20 = int_to_ptr.vmem [resolvable:$true] %s23_s20 }
   0xb   :  { %p499_p3 = scmp.ne.s32.totalorder %s684_s1, %s498_s23  ;;  %p502_p4 = scmp.lt.u32.totalorder %s498_s23, %s684_s1 }
   0xd   :  { %p504_p5 = pnand %p502_p4, %p499_p3 }
   0xf   :  { %507 = shalt.err (!%p504_p5)
}
  0x10   :  { %s508_s28 = scalar_lea.vmem %s24_s20, 384  ;;  %p513_p7 = scmp.lt.s32.totalorder %s24_s20, %s24_s20 }
  0x11   :  { %p509_p6 = scmp.ne.s32.totalorder %s24_s20, %s508_s28  ;;  %p514_p8 = scmp.lt.s32.totalorder %s508_s28, %s508_s28 }
  0x13   :  { %p515_p9 = por %p514_p8, %p513_p7 }
  0x15   :  { %p516_p10 = pnand %p515_p9, %p509_p6 }
  0x17   :  { %519 = shalt.err (!%p516_p10)
}
  0x18   :  { %s550_s0 = smov 128   ;;  %s551_s29 = smov 8  }
  0x19   :  { %29 = dma.hbm_to_vmem [thread:$0]  %s684_s1, 384, %s24_s20, [#allocation3], %s550_s0, %s550_s0, %s551_s29  }
  0x1a   :  { %542 = dma.done.wait [#allocation5], 16  }
  0x1b   :  { %543 = vsyncadd [#allocation5], 4294967280 }
  0x1c   :  { %544 = dma.done.wait [#allocation3], 384  }
  0x1d   :  { %545 = vsyncadd [#allocation3], 4294966912 }
  0x1e   :  { %36 = sfence }
  0x1f   :  { %v39_v0 = vld [vmem:[#allocation6] sm:$0xff]  ;;  %v595_v1 = vld [vmem:[#allocation6 + $0x8] sm:$0xff]  ;;  %v42_v2 = vlaneseq  ;;  %v552_v3 = vmov 0.0|0.0   ;;  %vm553_vm0 = vmmov 0   ;;  %v554_v5 = vmov 0.0   ;;  %v600_v8 = vld [vmem:[#allocation6 + $0x10] sm:$0xff] }
  0x20   :  { %449 = vmatprep.subr.bf16.mxu0 %v552_v3  ;;  %v450_v4 = vpack.c.bf16 %v595_v1, %v39_v0  ;;  %435 = vmatprep.mubr.msk.f32.mxu0 %vm553_vm0, %v554_v5  ;;  %vm66_vm3 = vcmask 195584   ;;  %v221_v12 = vmul.f32 %v39_v0, %v39_v0  ;;  %vm231_vm5 = vcmask 1043456   ;;  %s37_s1 = sld [smem:[#allocation2]]  ;;  %s415_s4 = sld [smem:[#allocation2 + $0x1]] }
  0x21   :  { %v43_v6 = vshrl.u32 %v42_v2, 7  ;;  %v47_v7 = vand.u32 127, %v42_v2  ;;  %438 = vmatprep.subr.mxu1 %v554_v5  ;;  %440 = vmatprep.mubr.msk.f32.mxu1 %vm553_vm0, %v554_v5  ;;  %vm243_vm7 = vcmask 27648   ;;  %v222_v54 = vmul.f32 %v595_v1, %v595_v1  ;;  %s555_s5 = smov [#allocation7]  }
  0x22   :  { %451 = vmatpush3.bf16.msra.mxu0 %v450_v4  ;;  %224 = vadd.xlane.f32.xlu1 %v221_v12  ;;  %v223_v63 = vmul.f32 %v600_v8, %v600_v8  ;;  %s405_s6 = sshll.u32 %s555_s5, 4  ;;  %s406_s6 = int_to_ptr.vmem [resolvable:$true] %s405_s6 }
  0x23   :  { %433 = vmatprep.subr.mxu0 %v554_v5  ;;  %v59_v9 = vmul.u32 5, %v43_v6  ;;  %v48_v18 = vmul.u32 5, %v47_v7  ;;  %vm241_vm6 = vcmp.eq.s32.totalorder %v43_v6, %v47_v7  ;;  %v44_v21 = vadd.s32 8, %v43_v6  ;;  %s520_s8 = scalar_lea.vmem %s406_s6, 16  ;;  %s524_s9 = scalar_lea.vmem %s406_s6, 32 }
  0x24   :  { %v607_v25 = vadd.s32 16, %v43_v6  ;;  %p521_p11 = scmp.ne.s32.totalorder %s406_s6, %s520_s8  ;;  %p525_p12 = scmp.lt.s32.totalorder %s406_s6, %s406_s6 }
  0x25   :  { %vm60_vm1 = vcmp.ge.s32.totalorder %v47_v7, %v59_v9  ;;  %v61_v10 = vadd.s32 5, %v59_v9  ;;  %v52_v22 = vadd.s32 5, %v48_v18  ;;  %vm50_vm8 = vcmp.ge.s32.totalorder %v44_v21, %v48_v18  ;;  %p526_p13 = scmp.lt.s32.totalorder %s524_s9, %s520_s8 }
  0x26   :  { %434 = vmatpush3.msra.mxu0 %v600_v8  ;;  %vm49_vm10 = vcmp.ge.s32.totalorder %v43_v6, %v48_v18  ;;  %vm51_vm13 = vcmp.ge.s32.totalorder %v607_v25, %v48_v18 }
  0x27   :  { %vm62_vm2 = vcmp.lt.s32.totalorder %v47_v7, %v61_v10  ;;  %vm54_vm9 = vcmp.lt.s32.totalorder %v44_v21, %v52_v22  ;;  %vm53_vm11 = vcmp.lt.s32.totalorder %v43_v6, %v52_v22  ;;  %vm55_vm14 = vcmp.lt.s32.totalorder %v607_v25, %v52_v22  ;;  %p527_p0 = por %p526_p13, %p525_p12 }
  0x28   :  { %vm63_vm4 = vmand %vm60_vm1, %vm62_vm2  ;;  %vm268_vm1 = vcmask 31744   ;;  %vm382_vm2 = vcmask 7168  }
  0x29   :  { %v416_v11 = vsel %vm63_vm4, 1.0, %v554_v5  ;;  %vm609_vm12 = vmand %vm50_vm8, %vm54_vm9  ;;  %p528_p1 = pnand %p527_p0, %p521_p11 }
  0x2a   :  { %436 = vmatmul.mubr.msk.f32.vlgmr.msra.gmra.mrb[0].mxu0 %vm66_vm3, %v416_v11  ;;  %vm615_vm15 = vmand %vm49_vm10, %vm53_vm11  ;;  %v419_v33 = vsel %vm609_vm12, 1.0, %v554_v5  ;;  %vm375_vm3 = vcmp.lt.s32.totalorder %v607_v25, 20 }
  0x2b   :  { %v418_v34 = vsel %vm615_vm15, 1.0, %v554_v5 }
  0xaf   :  { %v225_v43 = vpop.xlane.xlu1 %224 }
  0xb0   :  { %v235_v44 = vmax.f32 %v225_v43, 1e-16 }
  0xb2   :  { %462 = vrsqrt.f32 %v235_v44 }
  0xbc   :  { %v632_v46 = vpop.eup %462 }
  0xfd   :  { %v136_v13 = vpop.f32.mrb[0].mxu0 }
  0xfe   :  { %v140_v14 = vmul.f32 0.2, %v136_v13  ;;  %v437_v15 = vpop.f32.mrb[1].mxu0 }
 0x100   :  { %439 = vmatpush3.xpose.msra.mxu1 %v140_v14  ;;  %v230_v16 = vmul.f32 %v140_v14, %v140_v14 }
 0x102   :  { %v232_v17 = vsel %vm231_vm5, %v230_v16, 0.0 }
 0x103   :  { %233 = vadd.xlane.f32.xlu0 %v232_v17  ;;  %441 = vmatmul.mubr.f32.vlgmr.msra.gmra.mrb[0].mxu1 %v39_v0 }
 0x104   :  { %443 = vmatprep.mubr.msk.f32.mxu1 %vm553_vm0, %v554_v5 }
 0x107   :  { %444 = vmatmul.mubr.f32.gmra.mrb[2].mxu1 %v595_v1 }
 0x108   :  { %446 = vmatprep.mubr.msk.f32.mxu1 %vm553_vm0, %v554_v5  ;;  %vm619_vm0 = vmand %vm51_vm13, %vm55_vm14 }
 0x109   :  { %v420_v36 = vsel %vm619_vm0, 1.0, %v554_v5 }
 0x10b   :  { %447 = vmatmul.mubr.f32.gmra.mrb[4].mxu1 %v600_v8 }
 0x190   :  { %v234_v19 = vpop.xlane.xlu0 %233 }
 0x191   :  { %v242_v20 = vsel %vm241_vm6, %v234_v19, 0.0 }
 0x192   :  { %v244_v23 = vsel %vm243_vm7, %v242_v20, 0.0 }
 0x193   :  { %v245_v24 = vrot.slane %v244_v23, 4 }
 0x195   :  { %v246_v26 = vadd.f32 %v245_v24, %v244_v23 }
 0x197   :  { %v247_v27 = vrot.slane %v246_v26, 2 }
 0x199   :  { %v248_v29 = vadd.f32 %v247_v27, %v246_v26 }
 0x19b   :  { %v249_v31 = vrot.slane %v248_v29, 1 }
 0x19d   :  { %v250_v35 = vadd.f32 %v249_v31, %v248_v29 }
 0x19f   :  { %v279_v37 = vmul.f32 %v419_v33, %v250_v35  ;;  %v278_v38 = vmul.f32 %v418_v34, %v250_v35  ;;  %v280_v41 = vmul.f32 %v420_v36, %v250_v35  ;;  %v251_v45 = vmax.f32 %v250_v35, 1e-16 }
 0x1a1   :  { %v284_v39 = vsel %vm268_vm1, %v279_v37, 0.0  ;;  %v281_v40 = vsel %vm268_vm1, %v278_v38, 0.0  ;;  %v287_v42 = vsel %vm268_vm1, %v280_v41, 0.0  ;;  %464 = vrsqrt.f32 %v251_v45 }
 0x1a2   :  { %285 = vadd.xlane.f32.xlu0 %v284_v39  ;;  %282 = vadd.xlane.f32.xlu1 %v281_v40 }
 0x1a6   :  { %288 = vadd.xlane.f32.xlu0 %v287_v42 }
 0x1ab   :  { %v637_v51 = vpop.eup %464 }
 0x1d6   :  { %v207_v47 = vpop.f32.mrb[0].mxu1 }
 0x1d7   :  { %v253_v48 = vmul.f32 %v632_v46, %v207_v47  ;;  %v442_v49 = vpop.f32.mrb[1].mxu1  ;;  %v265_v50 = vsel %vm615_vm15, %v207_v47, 0.0  ;;  %v332_v47 = vstv %s37_s1 }
 0x1d8   :  { %v269_v52 = vsel %vm268_vm1, %v265_v50, 0.0 }
 0x1d9   :  { %v641_v53 = vmul.f32 %v637_v51, %v253_v48  ;;  %270 = vadd.xlane.f32.xlu0 %v269_v52 }
 0x1da   :  { %v212_v55 = vpop.f32.mrb[2].mxu1 }
 0x1db   :  { %v445_v56 = vpop.f32.mrb[3].mxu1  ;;  %v266_v57 = vsel %vm609_vm12, %v212_v55, 0.0 }
 0x1dc   :  { %v272_v58 = vsel %vm268_vm1, %v266_v57, 0.0 }
 0x1dd   :  { %226 = vadd.xlane.f32.xlu0 %v222_v54  ;;  %273 = vadd.xlane.f32.xlu1 %v272_v58 }
 0x1de   :  { %v648_v59 = vpop.f32.mrb[4].mxu1 }
 0x1df   :  { %v448_v60 = vpop.f32.mrb[5].mxu1  ;;  %v267_v61 = vsel %vm619_vm0, %v648_v59, 0.0 }
 0x1e0   :  { %v275_v62 = vsel %vm268_vm1, %v267_v61, 0.0 }
 0x1e1   :  { %276 = vadd.xlane.f32.xlu1 %v275_v62 }
 0x1e5   :  { %228 = vadd.xlane.f32.xlu1 %v223_v63 }
 0x22f   :  { %v286_v0 = vpop.xlane.xlu0 %285  ;;  %v283_v2 = vpop.xlane.xlu1 %282 }
 0x230   :  { %v299_v4 = vmul.f32 25.0, %v283_v2  ;;  %v300_v12 = vmul.f32 25.0, %v286_v0 }
 0x233   :  { %v289_v1 = vpop.xlane.xlu0 %288 }
 0x234   :  { %v301_v8 = vmul.f32 25.0, %v289_v1 }
 0x266   :  { %v271_v3 = vpop.xlane.xlu0 %270 }
 0x267   :  { %v302_v5 = vmul.f32 10.0, %v271_v3  ;;  %v290_v15 = vmul.f32 5.0, %v271_v3 }
 0x269   :  { %v305_v6 = vsub.f32 %v299_v4, %v302_v5  ;;  %v293_v22 = vsub.f32 %v290_v15, %v225_v43 }
 0x26a   :  { %v227_v7 = vpop.xlane.xlu0 %226  ;;  %v274_v9 = vpop.xlane.xlu1 %273 }
 0x26b   :  { %v308_v10 = vadd.f32 %v305_v6, %v225_v43  ;;  %v236_v11 = vmax.f32 %v227_v7, 1e-16  ;;  %v303_v13 = vmul.f32 10.0, %v274_v9  ;;  %v291_v31 = vmul.f32 5.0, %v274_v9 }
 0x26c   :  { %v296_v34 = vmul.f32 0.25, %v293_v22 }
 0x26d   :  { %v311_v14 = vmul.f32 0.0625, %v308_v10  ;;  %466 = vrsqrt.f32 %v236_v11  ;;  %v306_v16 = vsub.f32 %v300_v12, %v303_v13  ;;  %v294_v38 = vsub.f32 %v291_v31, %v227_v7 }
 0x26e   :  { %v277_v17 = vpop.xlane.xlu1 %276  ;;  %v314_v39 = vmul.f32 %v632_v46, %v296_v34 }
 0x26f   :  { %v317_v18 = vmax.f32 %v311_v14, 1e-16  ;;  %v304_v19 = vmul.f32 10.0, %v277_v17  ;;  %v309_v20 = vadd.f32 %v306_v16, %v227_v7  ;;  %v292_v41 = vmul.f32 5.0, %v277_v17 }
 0x270   :  { %v297_v45 = vmul.f32 0.25, %v294_v38 }
 0x271   :  { %468 = vrsqrt.f32 %v317_v18  ;;  %v307_v21 = vsub.f32 %v301_v8, %v304_v19  ;;  %v312_v23 = vmul.f32 0.0625, %v309_v20 }
 0x272   :  { %v229_v24 = vpop.xlane.xlu1 %228 }
 0x273   :  { %v237_v26 = vmax.f32 %v229_v24, 1e-16  ;;  %v310_v27 = vadd.f32 %v307_v21, %v229_v24  ;;  %v318_v29 = vmax.f32 %v312_v23, 1e-16  ;;  %v295_v44 = vsub.f32 %v292_v41, %v229_v24 }
 0x275   :  { %470 = vrsqrt.f32 %v237_v26  ;;  %v313_v33 = vmul.f32 0.0625, %v310_v27  ;;  %v298_v57 = vmul.f32 0.25, %v295_v44 }
 0x276   :  { %472 = vrsqrt.f32 %v318_v29 }
 0x277   :  { %v467_v35 = vpop.eup %466  ;;  %v319_v36 = vmax.f32 %v313_v33, 1e-16 }
 0x278   :  { %v254_v37 = vmul.f32 %v467_v35, %v212_v55  ;;  %v315_v54 = vmul.f32 %v467_v35, %v297_v45  ;;  %v336_v55 = vstv %s415_s4 }
 0x279   :  { %474 = vrsqrt.f32 %v319_v36 }
 0x27a   :  { %v257_v40 = vmul.f32 %v637_v51, %v254_v37 }
 0x27b   :  { %v469_v42 = vpop.eup %468 }
 0x27c   :  { %v323_v43 = vmul.f32 %v469_v42, %v314_v39 }
 0x27e   :  { %v326_v48 = vsel %vm615_vm15, %v323_v43, %v641_v53  ;;  %v340_v49 = vadd.f32 1e-06, %v323_v43 }
 0x27f   :  { %v471_v50 = vpop.eup %470  ;;  %v329_v52 = vadd.f32 1e-06, %v326_v48 }
 0x280   :  { %v473_v56 = vpop.eup %472  ;;  %v255_v46 = vmul.f32 %v471_v50, %v648_v59  ;;  %v343_v58 = vmul.f32 %v340_v49, %v332_v47  ;;  %v316_v63 = vmul.f32 %v471_v50, %v298_v57 }
 0x281   :  { %v324_v60 = vmul.f32 %v473_v56, %v315_v54  ;;  %v333_v61 = vmul.f32 %v332_v47, %v329_v52 }
 0x282   :  { %v258_v62 = vmul.f32 %v637_v51, %v255_v46  ;;  %v346_v0 = vadd.f32 %v343_v58, %v336_v55 }
 0x283   :  { %v475_v1 = vpop.eup %474  ;;  %v327_v30 = vsel %vm609_vm12, %v324_v60, %v257_v40  ;;  %v341_v53 = vadd.f32 1e-06, %v324_v60  ;;  %v337_v2 = vadd.f32 %v336_v55, %v333_v61 }
 0x284   :  { %v330_v3 = vadd.f32 1e-06, %v327_v30  ;;  %v325_v4 = vmul.f32 %v475_v1, %v316_v63 }
 0x285   :  { %v349_v5 = vmul.f32 1.442695, %v337_v2  ;;  %v344_v6 = vmul.f32 %v341_v53, %v332_v47 }
 0x286   :  { %v328_v59 = vsel %vm619_vm0, %v325_v4, %v258_v62  ;;  %v342_v7 = vadd.f32 1e-06, %v325_v4  ;;  %v334_v9 = vmul.f32 %v332_v47, %v330_v3 }
 0x287   :  { %v331_v10 = vadd.f32 1e-06, %v328_v59  ;;  %476 = vpow2.f32 %v349_v5  ;;  %v347_v51 = vadd.f32 %v344_v6, %v336_v55 }
 0x288   :  { %v338_v11 = vadd.f32 %v336_v55, %v334_v9  ;;  %v345_v12 = vmul.f32 %v342_v7, %v332_v47 }
 0x289   :  { %v335_v13 = vmul.f32 %v332_v47, %v331_v10 }
 0x28a   :  { %v351_v14 = vmul.f32 1.442695, %v338_v11  ;;  %v348_v28 = vadd.f32 %v345_v12, %v336_v55 }
 0x28b   :  { %v339_v15 = vadd.f32 %v336_v55, %v335_v13 }
 0x28c   :  { %478 = vpow2.f32 %v351_v14 }
 0x28d   :  { %v353_v16 = vmul.f32 1.442695, %v339_v15 }
 0x28f   :  { %480 = vpow2.f32 %v353_v16 }
 0x291   :  { %v477_v17 = vpop.eup %476 }
 0x292   :  { %v355_v8 = vsel %vm268_vm1, %v477_v17, 0.0 }
 0x293   :  { %356 = vadd.xlane.f32.xlu0 %v355_v8 }
 0x296   :  { %v479_v32 = vpop.eup %478 }
 0x297   :  { %v358_v18 = vsel %vm268_vm1, %v479_v32, 0.0 }
 0x298   :  { %359 = vadd.xlane.f32.xlu1 %v358_v18 }
 0x299   :  { %v481_v19 = vpop.eup %480 }
 0x29a   :  { %v361_v20 = vsel %vm268_vm1, %v481_v19, 0.0 }
 0x29b   :  { %362 = vadd.xlane.f32.xlu0 %v361_v20 }
 0x320   :  { %v357_v21 = vpop.xlane.xlu0 %356 }
 0x321   :  { %v364_v22 = vadd.f32 1e-06, %v357_v21 }
 0x323   :  { %482 = vlog2.f32 %v364_v22 }
 0x325   :  { %v360_v23 = vpop.xlane.xlu1 %359 }
 0x326   :  { %v365_v24 = vadd.f32 1e-06, %v360_v23 }
 0x328   :  { %484 = vlog2.f32 %v365_v24  ;;  %v363_v26 = vpop.xlane.xlu0 %362 }
 0x329   :  { %v366_v27 = vadd.f32 1e-06, %v363_v26 }
 0x32b   :  { %486 = vlog2.f32 %v366_v27 }
 0x32d   :  { %v483_v29 = vpop.eup %482 }
 0x32e   :  { %v368_v31 = vmul.f32 0.6931472, %v483_v29 }
 0x330   :  { %v376_v34 = vsub.f32 %v368_v31, %v346_v0 }
 0x332   :  { %v485_v33 = vpop.eup %484  ;;  %v383_v39 = vsel %vm382_vm2, %v376_v34, 0.0 }
 0x333   :  { %v370_v35 = vmul.f32 0.6931472, %v485_v33 }
 0x335   :  { %v487_v36 = vpop.eup %486  ;;  %v377_v37 = vsub.f32 %v370_v35, %v347_v51 }
 0x336   :  { %v372_v38 = vmul.f32 0.6931472, %v487_v36 }
 0x337   :  { %v384_v40 = vsel %vm382_vm2, %v377_v37, 0.0 }
 0x338   :  { %v378_v41 = vsub.f32 %v372_v38, %v348_v28  ;;  %v385_v42 = vadd.f32 %v384_v40, %v383_v39 }
 0x33a   :  { %v381_v43 = vsel %vm375_vm3, %v378_v41, 0.0 }
 0x33b   :  { %v386_v44 = vsel %vm382_vm2, %v381_v43, 0.0 }
 0x33c   :  { %v387_v45 = vadd.f32 %v386_v44, %v385_v42 }
 0x33e   :  { %388 = vadd.xlane.f32.xlu1 %v387_v45 }
 0x3cb   :  { %v389_v47 = vpop.xlane.xlu1 %388 }
 0x3cc   :  { %v390_v48 = vrot.slane %v389_v47, 4 }
 0x3ce   :  { %v391_v49 = vadd.f32 %v390_v48, %v389_v47 }
 0x3d0   :  { %v392_v50 = vrot.slane %v391_v49, 2 }
 0x3d2   :  { %v393_v52 = vadd.f32 %v392_v50, %v391_v49 }
 0x3d4   :  { %v394_v54 = vrot.slane %v393_v52, 1 }
 0x3d6   :  { %v395_v55 = vadd.f32 %v394_v54, %v393_v52 }
 0x3d8   :  { %452 = vpush %v395_v55 }
 0x409   :  { %s453_s7 = spop %452 }
 0x40a   :  { %v397_v25 = vstv %s453_s7 }
 0x40b   :  { %398 = vst [vmem:[#allocation7] sm:$0x1] %v397_v25 }
 0x40c   :  { %531 = shalt.err (!%p528_p1)
}
 0x40d   :  { %s532_s12 = scalar_lea.hbm %s685_s2, 16 }
 0x40e   :  { %p533_p2 = scmp.ne.s32.totalorder %s685_s2, %s532_s12  ;;  %p536_p3 = scmp.lt.u32.totalorder %s532_s12, %s685_s2 }
 0x410   :  { %p538_p4 = pnand %p536_p3, %p533_p2 }
 0x412   :  { %541 = shalt.err (!%p538_p4)
}
 0x413   :  { %408 = dma.vmem_to_hbm [thread:$0]  %s406_s6, 16, %s685_s2, [#allocation4]  }
 0x414   :  { %546 = dma.done.wait [#allocation4], 16  }
 0x415   :  { %547 = vsyncadd [#allocation4], 4294967280 }
 0x416   :  { %412 = vsyncpa [#allocation3], 1 }
 0x417   :  { %413 = vsyncpa [#allocation4], 1 }
 0x418   :  { %414 = vsyncpa [#allocation5], 1 }

</bundles_post_ra>
